<compile_context>
chip_gen: v6e
topology: v6e:2x2x1
jax: 0.10.0
libtpu: 0.0.40
codegen_flags: <defaults>
</compile_context>

<pallas_src>
import functools
import math

import jax
import jax.numpy as jnp
from jax.experimental import pallas as pl
from jax.experimental.pallas import tpu as pltpu


_NEG_BIG = -1.0e30  # finite "minus infinity" for masking (exp underflows to 0)


# ----------------------------------------------------------------------------
# Small path: single program, whole problem resident in VMEM.
# ----------------------------------------------------------------------------
def _ntxent_small_kernel(z1_ref, z2_ref, o_ref, *, inv_temp, eps, mm_dtype):
    z1 = z1_ref[...].astype(jnp.float32)
    z2 = z2_ref[...].astype(jnp.float32)
    n = z1.shape[0]
    two_n = 2 * n

    # F.normalize(dim=1): x / max(||x||, eps) == x * rsqrt(max(||x||^2, eps^2))
    n1 = z1 * jax.lax.rsqrt(
        jnp.maximum(jnp.sum(z1 * z1, axis=1, keepdims=True), eps * eps))
    n2 = z2 * jax.lax.rsqrt(
        jnp.maximum(jnp.sum(z2 * z2, axis=1, keepdims=True), eps * eps))

    # Label permutation swaps halves, so the target logit of row i and row i+N
    # is dot(n1_i, n2_i)/T.  Sum over all 2N rows = 2 * sum_i dot(n1_i, n2_i)/T.
    pos_sum = jnp.sum(n1 * n2) * jnp.float32(inv_temp)

    z_all = jnp.concatenate([n1, n2], axis=0)            # (2N, D)
    sim = jax.lax.dot_general(
        (z_all * jnp.float32(inv_temp)).astype(mm_dtype),  # fold 1/T into LHS
        z_all.astype(mm_dtype),
        dimension_numbers=(((1,), (1,)), ((), ())),
        preferred_element_type=jnp.float32)               # (2N, 2N)

    r = jax.lax.broadcasted_iota(jnp.int32, (two_n, two_n), 0)
    c = jax.lax.broadcasted_iota(jnp.int32, (two_n, two_n), 1)
    sim = jnp.where(r == c, jnp.float32(_NEG_BIG), sim)

    m = jnp.max(sim, axis=1, keepdims=True)
    lse = m + jnp.log(jnp.sum(jnp.exp(sim - m), axis=1, keepdims=True))  # (2N,1)

    o_ref[0, 0] = (jnp.sum(lse) - 2.0 * pos_sum) * jnp.float32(1.0 / two_n)


# ----------------------------------------------------------------------------
# Prologue: normalize all rows once (output in the matmul dtype).
# ----------------------------------------------------------------------------
def _normalize_rows_kernel(x_ref, o_ref, *, eps):
    x = x_ref[...].astype(jnp.float32)
    inv = jax.lax.rsqrt(
        jnp.maximum(jnp.sum(x * x, axis=1, keepdims=True), jnp.float32(eps * eps)))
    o_ref[...] = (x * inv).astype(o_ref.dtype)


# ----------------------------------------------------------------------------
# Tiled path: row blocks x column blocks, streaming (online) logsumexp.
# Inputs are already row-normalized by the prologue.
# ----------------------------------------------------------------------------
def _ntxent_tiled_kernel(zr_ref, zp_ref, zc_ref, o_ref,
                         nrow_sc, m_sc, l_sc,
                         *, inv_temp, n_valid, n_padded, mm_dtype):
    i = pl.program_id(0)          # row-block index ("parallel")
    j = pl.program_id(1)          # column-block index (reduction axis, last)
    nj = pl.num_programs(1)
    tq = zr_ref.shape[0]
    tk = zc_ref.shape[0]
    row0 = i * tq
    col0 = j * tk

    # New row block: cache the 1/T-scaled rows in the matmul dtype and reset
    # the online-softmax state.  (Rows are already normalized.)
    @pl.when(j == 0)
    def _start_row_block():
        nrow_sc[...] = (zr_ref[...].astype(jnp.float32)
                        * jnp.float32(inv_temp)).astype(mm_dtype)
        m_sc[...] = jnp.full_like(m_sc, _NEG_BIG)
        l_sc[...] = jnp.zeros_like(l_sc)

    # Similarity tile; contract over D directly (no transpose), f32 accumulate.
    s = jax.lax.dot_general(
        nrow_sc[...], zc_ref[...],
        dimension_numbers=(((1,), (1,)), ((), ())),
        preferred_element_type=jnp.float32)               # (tq, tk)

    # Mask the global diagonal (self-similarity) with a large finite negative.
    r_g = row0 + jax.lax.broadcasted_iota(jnp.int32, (tq, tk), 0)
    c_g = col0 + jax.lax.broadcasted_iota(jnp.int32, (tq, tk), 1)
    s = jnp.where(r_g == c_g, jnp.float32(_NEG_BIG), s)

    # Mask padded columns (only generated when padding is actually present).
    if n_padded > n_valid:
        c_loc = jnp.where(c_g >= n_padded, c_g - n_padded, c_g)
        s = jnp.where(c_loc >= n_valid, jnp.float32(_NEG_BIG), s)

    # Online (streaming) logsumexp update.
    m_prev = m_sc[...]
    m_new = jnp.maximum(m_prev, jnp.max(s, axis=1, keepdims=True))
    l_sc[...] = (jnp.exp(m_prev - m_new) * l_sc[...]
                 + jnp.sum(jnp.exp(s - m_new), axis=1, keepdims=True))
    m_sc[...] = m_new

    # Row block finished: per-row loss = lse - positive logit; write the block
    # partial sum as a lane-dense (8, 128) slab (one value broadcast).
    @pl.when(j == nj - 1)
    def _finish_row_block():
        lse = m_sc[...] + jnp.log(l_sc[...])              # (tq, 1)
        zr = zr_ref[...].astype(jnp.float32)
        zp = zp_ref[...].astype(jnp.float32)
        pos = jnp.sum(zr * zp, axis=1, keepdims=True) * jnp.float32(inv_temp)
        per_row = lse - pos
        if n_padded > n_valid:
            r_col = row0 + jax.lax.broadcasted_iota(jnp.int32, (tq, 1), 0)
            r_loc = jnp.where(r_col >= n_padded, r_col - n_padded, r_col)
            per_row = jnp.where(r_loc < n_valid, per_row, jnp.float32(0.0))
        partial = jnp.sum(per_row, keepdims=True)         # (1, 1)
        o_ref[...] = jnp.broadcast_to(partial, o_ref.shape)


# ----------------------------------------------------------------------------
# Wrapper
# ----------------------------------------------------------------------------
def ntxent_loss(z1, z2, temperature=0.07, *, block_q=512, block_k=1024,
                mxu_dtype=None):
    """NT-Xent loss. `mxu_dtype=jnp.bfloat16` casts matmul operands (f32
    accumulation) — recommended on v5e for float32 inputs."""
    assert z1.ndim == 2 and z1.shape == z2.shape
    assert block_q % 8 == 0 and block_k % 8 == 0
    N, D = z1.shape
    two_n = 2 * N
    inv_temp = 1.0 / float(temperature)
    eps = 1e-12
    mm_dtype = jnp.dtype(mxu_dtype) if mxu_dtype is not None else jnp.dtype(z1.dtype)
    mm_bytes = jnp.dtype(mm_dtype).itemsize

    # --------------------------- small path --------------------------------
    small_threshold = max(256, min(block_q, 1024))
    small_bytes = 4 * (two_n * two_n + 6 * two_n * D)
    if two_n <= small_threshold and small_bytes <= 12 * 1024 * 1024:
        kernel = functools.partial(_ntxent_small_kernel, inv_temp=inv_temp,
                                   eps=eps, mm_dtype=mm_dtype)
        out = pl.pallas_call(
            kernel,
            out_shape=jax.ShapeDtypeStruct((1, 1), jnp.float32),
            in_specs=[pl.BlockSpec(memory_space=pltpu.MemorySpace.VMEM),
                      pl.BlockSpec(memory_space=pltpu.MemorySpace.VMEM)],
            out_specs=pl.BlockSpec(memory_space=pltpu.MemorySpace.SMEM),
        )(z1, z2)
        return out[0, 0]

    # ------------------- tiled path: VMEM-aware block clamp ----------------
    def _vmem_estimate(bq, bk):
        blocks = (2 * bq + bk) * D * mm_bytes * 2   # row+partner+col, 2 buffers
        scratch = bq * D * mm_bytes
        sim = bq * bk * 4 * 3                        # s, exp(s), headroom (f32)
        return blocks + scratch + sim

    budget = 12 * 1024 * 1024
    while _vmem_estimate(block_q, block_k) > budget and block_k > 256:
        block_k //= 2
    while _vmem_estimate(block_q, block_k) > budget and block_q > 256:
        block_q //= 2

    # Pad N up so that (a) 2*N_p tiles exactly by block_q and block_k and
    # (b) the block-level partner remap (i <-> i + half_blocks) is exact.
    ck = block_k // math.gcd(2, block_k)
    m_align = block_q * ck // math.gcd(block_q, ck)
    n_pad = ((N + m_align - 1) // m_align) * m_align
    if n_pad != N:
        z1 = jnp.pad(z1, ((0, n_pad - N), (0, 0)))
        z2 = jnp.pad(z2, ((0, n_pad - N), (0, 0)))
    z_all = jnp.concatenate([z1, z2], axis=0)            # (2*N_p, D)

    two_np = 2 * n_pad
    n_row_blocks = two_np // block_q
    n_col_blocks = two_np // block_k
    half_blocks = n_pad // block_q

    # Prologue: normalize every row once, stored in the matmul dtype.
    z_norm = pl.pallas_call(
        functools.partial(_normalize_rows_kernel, eps=eps),
        out_shape=jax.ShapeDtypeStruct((two_np, D), mm_dtype),
        grid=(n_row_blocks,),
        in_specs=[pl.BlockSpec((block_q, D), lambda i: (i, 0))],
        out_specs=pl.BlockSpec((block_q, D), lambda i: (i, 0)),
        compiler_params=pltpu.CompilerParams(dimension_semantics=("parallel",)),
    )(z_all)

    kernel = functools.partial(_ntxent_tiled_kernel, inv_temp=inv_temp,
                               n_valid=N, n_padded=n_pad, mm_dtype=mm_dtype)

    def _row_map(i, j):
        return (i, 0)

    def _partner_map(i, j):
        # Partner of row block i is the matching block in the other half.
        return (jnp.where(i < half_blocks, i + half_blocks, i - half_blocks), 0)

    def _col_map(i, j):
        return (j, 0)

    cp_kwargs = dict(dimension_semantics=("parallel", "arbitrary"))
    est = _vmem_estimate(block_q, block_k)
    if est > budget:
        cp_kwargs["vmem_limit_bytes"] = int(min(56 * 1024 * 1024, est + (4 << 20)))

    partials = pl.pallas_call(
        kernel,
        out_shape=jax.ShapeDtypeStruct((n_row_blocks * 8, 128), jnp.float32),
        grid=(n_row_blocks, n_col_blocks),
        in_specs=[pl.BlockSpec((block_q, D), _row_map),       # row block
                  pl.BlockSpec((block_q, D), _partner_map),   # positive pairs
                  pl.BlockSpec((block_k, D), _col_map)],      # column block
        out_specs=pl.BlockSpec((8, 128), lambda i, j: (i, 0)),
        scratch_shapes=[
            pltpu.VMEM((block_q, D), mm_dtype),   # 1/T-scaled normalized rows
            pltpu.VMEM((block_q, 1), jnp.float32),  # running row max
            pltpu.VMEM((block_q, 1), jnp.float32),  # running row sum-exp
        ],
        compiler_params=pltpu.CompilerParams(**cp_kwargs),
    )(z_norm, z_norm, z_norm)

    # Tiny final reduction of per-row-block partial sums (keeps the row axis
    # "parallel" for megacore); mean is over the 2N real rows.
    return jnp.sum(partials[::8, 0]) * (1.0 / two_n)


# ----------------------------------------------------------------------------
# Pure-JAX reference (mirrors the PyTorch forward exactly).
# ----------------------------------------------------------------------------
def _reference_ntxent(z1, z2, temperature=0.07):
    eps = 1e-12
    n1 = z1 / jnp.maximum(jnp.linalg.norm(z1, axis=1, keepdims=True), eps)
    n2 = z2 / jnp.maximum(jnp.linalg.norm(z2, axis=1, keepdims=True), eps)
    z_all = jnp.concatenate([n1, n2], axis=0)
    N = z1.shape[0]
    sim = (z_all @ z_all.T) / temperature
    sim = jnp.where(jnp.eye(2 * N, dtype=bool), -jnp.inf, sim)
    labels = jnp.concatenate([jnp.arange(N) + N, jnp.arange(N)])
    lse = jax.scipy.special.logsumexp(sim, axis=1)
    tgt = sim[jnp.arange(2 * N), labels]
    return jnp.mean(lse - tgt)


if __name__ == "__main__":
    key = jax.random.PRNGKey(0)
    k1, k2, k3, k4, k5, k6 = jax.random.split(key, 6)

    # 1) Small path: batch of 8 projection vectors, hidden=32 (single program).
    z1 = jax.random.normal(k1, (8, 32), dtype=jnp.float32)
    z2 = jax.random.normal(k2, (8, 32), dtype=jnp.float32)
    loss_small = jax.block_until_ready(ntxent_loss(z1, z2, temperature=0.07))
    ref_small = _reference_ntxent(z1, z2, temperature=0.07)
    assert jnp.abs(loss_small - ref_small) < 1e-2, (loss_small, ref_small)

    # 2) Tiled streaming path, tile-divisible: 2N=512, D=128 -> grid (4, 2).
    z1b = jax.random.normal(k3, (256, 128), dtype=jnp.float32)
    z2b = jax.random.normal(k4, (256, 128), dtype=jnp.float32)
    loss_big = jax.block_until_ready(
        ntxent_loss(z1b, z2b, temperature=0.07, block_q=128, block_k=256))
    ref_big = _reference_ntxent(z1b, z2b, temperature=0.07)
    assert jnp.abs(loss_big - ref_big) < 1e-2, (loss_big, ref_big)

    # 3) Tiled path with ragged size (padded internally): 2N=400, D=96.
    z1c = jax.random.normal(k5, (200, 96), dtype=jnp.float32)
    z2c = jax.random.normal(k6, (200, 96), dtype=jnp.float32)
    loss_pad = jax.block_until_ready(
        ntxent_loss(z1c, z2c, temperature=0.07, block_q=128, block_k=256))
    ref_pad = _reference_ntxent(z1c, z2c, temperature=0.07)
    assert jnp.abs(loss_pad - ref_pad) < 1e-2, (loss_pad, ref_pad)

    # 4) bf16 MXU operands (v5e-friendly) with f32 accumulation, loose tol.
    loss_bf16 = jax.block_until_ready(
        ntxent_loss(z1b, z2b, temperature=0.07, block_q=128, block_k=256,
                    mxu_dtype=jnp.bfloat16))
    assert jnp.abs(loss_bf16 - ref_big) < 1e-1, (loss_bf16, ref_big)

    print("KERNEL_OK")
</pallas_src>

<mosaic_0001>
module attributes {stable_mosaic.version = 11 : i64} {
  func.func @_ntxent_small_kernel(%arg0: memref<8x32xf32, #tpu.memory_space<vmem>>, %arg1: memref<8x32xf32, #tpu.memory_space<vmem>>, %arg2: memref<1x1xf32, #tpu.memory_space<smem>>) attributes {dimension_semantics = [], scalar_prefetch = 0 : i64, scratch_operands = 0 : i64, tpu.core_type = #tpu.core_type<tc>} {
    %c0 = arith.constant 0 : index
    %c0_0 = arith.constant 0 : index
    %0 = vector.load %arg0[%c0, %c0_0] : memref<8x32xf32, #tpu.memory_space<vmem>>, vector<8x32xf32>
    %c0_1 = arith.constant 0 : index
    %c0_2 = arith.constant 0 : index
    %1 = vector.load %arg1[%c0_1, %c0_2] : memref<8x32xf32, #tpu.memory_space<vmem>>, vector<8x32xf32>
    %2 = arith.mulf %0, %0 : vector<8x32xf32>
    %cst = arith.constant dense<0.000000e+00> : vector<8xf32>
    %3 = vector.multi_reduction <add>, %2, %cst [1] : vector<8x32xf32> to vector<8xf32>
    %4 = vector.shape_cast %3 : vector<8xf32> to vector<8x1xf32>
    %cst_3 = arith.constant 1.000000e-24 : f32
    %5 = vector.broadcast %cst_3 : f32 to vector<8x1xf32>
    %6 = arith.maximumf %4, %5 : vector<8x1xf32>
    %7 = math.rsqrt %6 : vector<8x1xf32>
    %8 = vector.broadcast %7 : vector<8x1xf32> to vector<8x32xf32>
    %9 = arith.mulf %0, %8 : vector<8x32xf32>
    %10 = arith.mulf %1, %1 : vector<8x32xf32>
    %cst_4 = arith.constant dense<0.000000e+00> : vector<8xf32>
    %11 = vector.multi_reduction <add>, %10, %cst_4 [1] : vector<8x32xf32> to vector<8xf32>
    %12 = vector.shape_cast %11 : vector<8xf32> to vector<8x1xf32>
    %cst_5 = arith.constant 1.000000e-24 : f32
    %13 = vector.broadcast %cst_5 : f32 to vector<8x1xf32>
    %14 = arith.maximumf %12, %13 : vector<8x1xf32>
    %15 = math.rsqrt %14 : vector<8x1xf32>
    %16 = vector.broadcast %15 : vector<8x1xf32> to vector<8x32xf32>
    %17 = arith.mulf %1, %16 : vector<8x32xf32>
    %18 = arith.mulf %9, %17 : vector<8x32xf32>
    %19 = vector.shape_cast %18 : vector<8x32xf32> to vector<1x8x32xf32>
    %cst_6 = arith.constant dense<0.000000e+00> : vector<1xf32>
    %20 = vector.multi_reduction <add>, %19, %cst_6 [1, 2] : vector<1x8x32xf32> to vector<1xf32>
    %21 = vector.shape_cast %20 : vector<1xf32> to vector<1x1x1xf32>
    %22 = vector.extract %21[0, 0, 0] : f32 from vector<1x1x1xf32>
    %cst_7 = arith.constant 14.2857141 : f32
    %23 = arith.mulf %22, %cst_7 : f32
    %24 = tpu.concatenate %9, %17 in 0 : vector<8x32xf32>, vector<8x32xf32> -> vector<16x32xf32>
    %cst_8 = arith.constant 14.2857141 : f32
    %25 = vector.broadcast %cst_8 : f32 to vector<16x32xf32>
    %26 = arith.mulf %24, %25 : vector<16x32xf32>
    %cst_9 = arith.constant dense<0.000000e+00> : vector<16x16xf32>
    %27 = tpu.matmul %26, %24, %cst_9 {dimension_numbers = #tpu.dot_dimension_numbers<[1], [1], [0], [0], [0, 0, 1, 0], [], []>} : vector<16x32xf32>, vector<16x32xf32>, vector<16x16xf32> -> vector<16x16xf32>
    %28 = tpu.iota {dimensions = array<i32: 0>} : vector<16x16xi32>
    %29 = tpu.iota {dimensions = array<i32: 1>} : vector<16x16xi32>
    %30 = arith.cmpi eq, %28, %29 : vector<16x16xi32>
    %cst_10 = arith.constant -1.000000e+30 : f32
    %31 = vector.broadcast %cst_10 : f32 to vector<16x16xf32>
    %32 = arith.select %30, %31, %27 : vector<16x16xi1>, vector<16x16xf32>
    %cst_11 = arith.constant dense<0xFF800000> : vector<16xf32>
    %33 = vector.multi_reduction <maximumf>, %32, %cst_11 [1] : vector<16x16xf32> to vector<16xf32>
    %34 = vector.shape_cast %33 : vector<16xf32> to vector<16x1xf32>
    %35 = vector.broadcast %34 : vector<16x1xf32> to vector<16x16xf32>
    %36 = arith.subf %32, %35 : vector<16x16xf32>
    %37 = math.exp %36 : vector<16x16xf32>
    %cst_12 = arith.constant dense<0.000000e+00> : vector<16xf32>
    %38 = vector.multi_reduction <add>, %37, %cst_12 [1] : vector<16x16xf32> to vector<16xf32>
    %39 = vector.shape_cast %38 : vector<16xf32> to vector<16x1xf32>
    %40 = math.log %39 : vector<16x1xf32>
    %41 = arith.addf %34, %40 : vector<16x1xf32>
    %42 = vector.shape_cast %41 : vector<16x1xf32> to vector<1x16x1xf32>
    %cst_13 = arith.constant dense<0.000000e+00> : vector<1xf32>
    %43 = vector.multi_reduction <add>, %42, %cst_13 [1, 2] : vector<1x16x1xf32> to vector<1xf32>
    %44 = vector.shape_cast %43 : vector<1xf32> to vector<1x1x1xf32>
    %45 = vector.extract %44[0, 0, 0] : f32 from vector<1x1x1xf32>
    %cst_14 = arith.constant 2.000000e+00 : f32
    %46 = arith.mulf %cst_14, %23 : f32
    %47 = arith.subf %45, %46 : f32
    %cst_15 = arith.constant 6.250000e-02 : f32
    %48 = arith.mulf %47, %cst_15 : f32
    %c0_16 = arith.constant 0 : index
    %c0_17 = arith.constant 0 : index
    %49 = memref.load %arg2[%c0_16, %c0_17] : memref<1x1xf32, #tpu.memory_space<smem>>
    memref.store %48, %arg2[%c0_16, %c0_17] : memref<1x1xf32, #tpu.memory_space<smem>>
    return
  }
}

</mosaic_0001>

<bundles_post_ra>
// kernel: tpu_custom_call.1
= control target key start
LH: loop header
LB: loop body
LE: loop exit
PB: predicated region body
PF: predicated region fallthrough
CT: control target
= control target key end

     0   :  { %7 = vsyncpa [#allocation3], 0  ;;  %s349_s0 = inlined_call_operand.hbm [shape: f32[8,32], index: 0, kind: input, shape index: {}]   ;;  %s350_s1 = inlined_call_operand.hbm [shape: f32[8,32], index: 1, kind: input, shape index: {}]   ;;  %s351_s2 = inlined_call_operand.hbm [shape: f32[1,1], index: 2, kind: output, shape index: {}]  }
   0x1   :  { %8 = vsyncpa [#allocation6], 0 }
   0x2   :  { %9 = vsyncpa [#allocation4], 0  ;;  %s309_s9 = smov [#allocation2]   ;;  %s310_s11 = smov [#allocation5]  }
   0x3   :  { %s16_s10 = sshll.u32 %s309_s9, 4  ;;  %s26_s12 = sshll.u32 %s310_s11, 4  ;;  %s17_s10 = int_to_ptr.vmem [resolvable:$true] %s16_s10  ;;  %s27_s12 = int_to_ptr.vmem [resolvable:$true] %s26_s12 }
   0x4   :  { %s263_s13 = scalar_lea.vmem %s17_s10, 128  ;;  %p268_p1 = scmp.lt.s32.totalorder %s17_s10, %s17_s10 }
   0x5   :  { %p264_p0 = scmp.ne.s32.totalorder %s17_s10, %s263_s13  ;;  %p269_p2 = scmp.lt.s32.totalorder %s263_s13, %s263_s13 }
   0x7   :  { %p270_p3 = por %p269_p2, %p268_p1 }
   0x9   :  { %p271_p4 = pnand %p270_p3, %p264_p0 }
   0xb   :  { %274 = shalt.err (!%p271_p4)
}
   0xc   :  { %19 = dma.hbm_to_vmem [thread:$0]  %s349_s0, 128, %s17_s10, [#allocation3]  }
   0xd   :  { %s283_s16 = scalar_lea.vmem %s27_s12, 128  ;;  %p288_p6 = scmp.lt.s32.totalorder %s27_s12, %s27_s12 }
   0xe   :  { %p284_p5 = scmp.ne.s32.totalorder %s27_s12, %s283_s16  ;;  %p289_p7 = scmp.lt.s32.totalorder %s283_s16, %s283_s16 }
  0x10   :  { %p290_p8 = por %p289_p7, %p288_p6 }
  0x12   :  { %p291_p9 = pnand %p290_p8, %p284_p5 }
  0x14   :  { %294 = shalt.err (!%p291_p9)
}
  0x15   :  { %29 = dma.hbm_to_vmem [thread:$0]  %s350_s1, 128, %s27_s12, [#allocation6]  }
  0x16   :  { %303 = dma.done.wait [#allocation3], 128  }
  0x17   :  { %304 = vsyncadd [#allocation3], 4294967168 }
  0x18   :  { %305 = dma.done.wait [#allocation6], 128  }
  0x19   :  { %306 = vsyncadd [#allocation6], 4294967168  ;;  %v37_v0 = vld [vmem:[#allocation5] sm:$0xff]  ;;  %vm39_vm0 = vcmask 261120   ;;  %v36_v1 = vld [vmem:[#allocation2] sm:$0xff]  ;;  %v154_v17 = vlaneseq  ;;  %vm163_vm3 = vcmask 130048  }
  0x1a   :  { %v46_v2 = vmul.f32 %v37_v0, %v37_v0  ;;  %v38_v3 = vmul.f32 %v36_v1, %v36_v1  ;;  %vm188_vm4 = vcmask 7168   ;;  %s311_s23 = smov [#allocation7]  }
  0x1b   :  { %v155_v18 = vshrl.u32 %v154_v17, 7  ;;  %v158_v20 = vand.u32 127, %v154_v17 }
  0x1c   :  { %v47_v4 = vsel %vm39_vm0, %v46_v2, 0.0  ;;  %v40_v5 = vsel %vm39_vm0, %v38_v3, 0.0 }
  0x1d   :  { %48 = vadd.xlane.f32.xlu0 %v47_v4  ;;  %v156_v19 = vadd.s32 8, %v155_v18  ;;  %vm159_vm1 = vcmp.eq.s32.totalorder %v155_v18, %v158_v20 }
  0x1f   :  { %vm160_vm2 = vcmp.eq.s32.totalorder %v156_v19, %v158_v20 }
  0x21   :  { %41 = vadd.xlane.f32.xlu0 %v40_v5 }
  0xa6   :  { %v49_v6 = vpop.xlane.xlu0 %48 }
  0xa7   :  { %v50_v7 = vmax.f32 %v49_v6, 1e-24 }
  0xa9   :  { %243 = vrsqrt.f32 %v50_v7 }
  0xaa   :  { %v42_v8 = vpop.xlane.xlu0 %41 }
  0xab   :  { %v43_v9 = vmax.f32 %v42_v8, 1e-24 }
  0xad   :  { %245 = vrsqrt.f32 %v43_v9 }
  0xb6   :  { %v244_v10 = vpop.eup %243 }
  0xb7   :  { %v52_v11 = vmul.f32 %v244_v10, %v37_v0 }
  0xb9   :  { %229 = vmatprep.subr.msk.mxu0 %vm39_vm0, %v52_v11  ;;  %v66_v16 = vmul.f32 14.285714, %v52_v11 }
  0xba   :  { %v246_v12 = vpop.eup %245  ;;  %230 = vmatpush3.xpose.msk.msra.mxu0 %vm39_vm0, %v52_v11 }
  0xbb   :  { %v45_v13 = vmul.f32 %v246_v12, %v36_v1 }
  0xbd   :  { %231 = vmatprep.subr.msk.mxu0 %vm39_vm0, %v45_v13  ;;  %v65_v14 = vmul.f32 14.285714, %v45_v13  ;;  %v53_v15 = vmul.f32 %v52_v11, %v45_v13 }
  0xbe   :  { %232 = vmatpush3.xpose.msk.msra.mxu0 %vm39_vm0, %v45_v13 }
  0xbf   :  { %233 = vmatprep.mubr.msk.f32.mxu0 %vm39_vm0, %v65_v14  ;;  %v54_v37 = vsel %vm39_vm0, %v53_v15, 0.0 }
  0xc1   :  { %234 = vmatmul.mubr.msk.f32.vlgmr.msra.gmra.mxu0 %vm39_vm0, %v66_v16 }
 0x181   :  { %v235_v21 = vpop.f32.mrf.mxu0 }
 0x182   :  { %v162_v25 = vsel %vm160_vm2, -1e+30, %v235_v21 }
 0x183   :  { %v145_v22 = vpop.f32.mrf.mxu0  ;;  %v167_v26 = vsel %vm163_vm3, %v162_v25, -inf }
 0x184   :  { %v161_v23 = vsel %vm159_vm1, -1e+30, %v145_v22 }
 0x185   :  { %v164_v24 = vsel %vm163_vm3, %v161_v23, -inf }
 0x186   :  { %165 = vmax.xlane.f32.xlu1 %v164_v24 }
 0x18a   :  { %168 = vmax.xlane.f32.xlu1 %v167_v26 }
 0x20f   :  { %v166_v27 = vpop.xlane.xlu1 %165 }
 0x210   :  { %v170_v28 = vsub.f32 %v161_v23, %v166_v27 }
 0x212   :  { %v172_v29 = vmul.f32 1.442695, %v170_v28 }
 0x213   :  { %v169_v30 = vpop.xlane.xlu1 %168 }
 0x214   :  { %247 = vpow2.f32 %v172_v29  ;;  %v171_v31 = vsub.f32 %v162_v25, %v169_v30 }
 0x216   :  { %v174_v32 = vmul.f32 1.442695, %v171_v31 }
 0x218   :  { %249 = vpow2.f32 %v174_v32 }
 0x221   :  { %v248_v33 = vpop.eup %247 }
 0x222   :  { %v176_v34 = vsel %vm163_vm3, %v248_v33, 0.0 }
 0x223   :  { %177 = vadd.xlane.f32.xlu0 %v176_v34 }
 0x225   :  { %v250_v35 = vpop.eup %249 }
 0x226   :  { %v179_v36 = vsel %vm163_vm3, %v250_v35, 0.0 }
 0x227   :  { %180 = vadd.xlane.f32.xlu1 %v179_v36  ;;  %55 = vadd.xlane.f32.xlu0 %v54_v37 }
 0x2ac   :  { %v178_v38 = vpop.xlane.xlu0 %177 }
 0x2ad   :  { %251 = vlog2.f32 %v178_v38 }
 0x2b0   :  { %v181_v39 = vpop.xlane.xlu1 %180  ;;  %v56_v40 = vpop.xlane.xlu0 %55 }
 0x2b1   :  { %253 = vlog2.f32 %v181_v39  ;;  %v57_v41 = vrot.slane %v56_v40, 4 }
 0x2b3   :  { %v58_v42 = vadd.f32 %v57_v41, %v56_v40 }
 0x2b5   :  { %v59_v43 = vrot.slane %v58_v42, 2 }
 0x2b7   :  { %v60_v44 = vadd.f32 %v59_v43, %v58_v42 }
 0x2b9   :  { %v61_v45 = vrot.slane %v60_v44, 1 }
 0x2ba   :  { %v252_v46 = vpop.eup %251 }
 0x2bb   :  { %v183_v47 = vmul.f32 0.6931472, %v252_v46  ;;  %v62_v48 = vadd.f32 %v61_v45, %v60_v44 }
 0x2bd   :  { %236 = vpush %v62_v48  ;;  %v186_v51 = vadd.f32 %v183_v47, %v166_v27 }
 0x2be   :  { %v254_v49 = vpop.eup %253 }
 0x2bf   :  { %v185_v50 = vmul.f32 0.6931472, %v254_v49  ;;  %v189_v53 = vsel %vm188_vm4, %v186_v51, 0.0 }
 0x2c1   :  { %v187_v52 = vadd.f32 %v185_v50, %v169_v30 }
 0x2c3   :  { %v190_v54 = vsel %vm188_vm4, %v187_v52, 0.0 }
 0x2c4   :  { %v191_v55 = vadd.f32 %v190_v54, %v189_v53 }
 0x2c6   :  { %192 = vadd.xlane.f32.xlu1 %v191_v55 }
 0x2ee   :  { %s237_s0 = spop %236 }
 0x2ef   :  { %s64_s1 = smul.f32 14.285714, %s237_s0 }
 0x2f1   :  { %s201_s19 = smul.f32 2.0, %s64_s1 }
 0x34f   :  { %v193_v56 = vpop.xlane.xlu1 %192 }
 0x350   :  { %v194_v57 = vrot.slane %v193_v56, 4 }
 0x352   :  { %v195_v58 = vadd.f32 %v194_v57, %v193_v56 }
 0x354   :  { %v196_v59 = vrot.slane %v195_v58, 2 }
 0x356   :  { %v197_v60 = vadd.f32 %v196_v59, %v195_v58 }
 0x358   :  { %v198_v61 = vrot.slane %v197_v60, 1 }
 0x35a   :  { %v199_v62 = vadd.f32 %v198_v61, %v197_v60 }
 0x35c   :  { %238 = vpush %v199_v62 }
 0x38d   :  { %s239_s20 = spop %238 }
 0x38e   :  { %s202_s21 = ssub.f32 %s239_s20, %s201_s19 }
 0x390   :  { %s203_s22 = smul.f32 0.0625, %s202_s21 }
 0x392   :  { %205 = sst [smem:[#allocation7]] %s203_s22 }
 0x393   :  { %213 = dma.smem_to_hbm %s311_s23, 16, %s351_s2, [#allocation4]  }
 0x394   :  { %307 = dma.done.wait [#allocation4], 16  }
 0x395   :  { %308 = vsyncadd [#allocation4], 4294967280 }
 0x396   :  { %217 = sfence }
 0x397   :  { %218 = vsyncpa [#allocation3], 1 }
 0x398   :  { %219 = vsyncpa [#allocation6], 1 }
 0x399   :  { %220 = vsyncpa [#allocation4], 1 }

</bundles_post_ra>
